<compile_context>
chip_gen: v6e
topology: v6e:2x2x1
jax: 0.10.0
libtpu: 0.0.40
codegen_flags: <defaults>
</compile_context>

<pallas_src>
import functools

import jax
import jax.numpy as jnp
from jax import lax
from jax.experimental import pallas as pl
from jax.experimental.pallas import tpu as pltpu

_SUBLANE = 16      # row-tile granularity: multiple of 16 (bf16 packing) and of 8 (f32)
_LANE = 128        # vocab-tile granularity


def _vmem_capacity_bytes() -> int:
    try:
        return int(pltpu.get_tpu_info().vmem_capacity_bytes)
    except Exception:
        return 64 << 20   # conservative fallback (v7x per-TensorCore VMEM)


def _auto_tiles(n_rows, vocab, itemsize):
    """Pick (tile_n, tile_v) from the real per-step working set:
         2 * tile_n * tile_v * itemsize   (double-buffered logits block)
       + 4 * tile_n * tile_v * 4          (f32 temps: upcast x, exp, weights, product)
    capped well under the per-generation VMEM capacity."""
    capacity = _vmem_capacity_bytes()
    budget = max(min(capacity - (16 << 20), 64 << 20), 16 << 20)   # ~48 MiB v7x, 64 MiB v5e/v6e
    bpe = 2 * itemsize + 16                                        # bytes per (row, col) element

    # Path 1: whole vocab row per step (no V tiling) if a reasonable row tile fits.
    rows_full_v = budget // max(1, vocab * bpe)
    if rows_full_v >= min(n_rows, _SUBLANE):
        cap = 2048 if vocab <= 4096 else 1024          # bigger tiles amortize per-step overhead
        tile_n = min(rows_full_v, cap, n_rows)
        if tile_n < n_rows:
            tile_n = max(_SUBLANE, (tile_n // _SUBLANE) * _SUBLANE)
        else:
            tile_n = n_rows                             # full extent: no (8,128) constraint
        return int(tile_n), int(vocab), budget

    # Path 2: LM-sized vocab -> also tile V (online logsumexp inside the kernel),
    # keeping the row tile large for DMA efficiency.
    if n_rows <= _SUBLANE:
        tile_n = n_rows
    else:
        tile_n = max(_SUBLANE, min(128, (n_rows // _SUBLANE) * _SUBLANE))
    tile_v = budget // max(1, tile_n * bpe)
    tile_v = max(_LANE, (tile_v // _LANE) * _LANE)
    tile_v = min(tile_v, vocab)
    return int(tile_n), int(tile_v), budget


def _make_kernel(eps, pad_idx, vocab, n_rows, tile_n, tile_v):
    w_hit = float(1.0 - eps + eps / vocab)
    w_miss = float(eps / vocab)
    row_ragged = (n_rows % tile_n) != 0
    v_ragged = (vocab % tile_v) != 0

    def kernel(logits_ref, labels_ref, sum_ref, cnt_ref, m_sc, l_sc, ws_sc):
        i = pl.program_id(0)
        v = pl.program_id(1)
        nv = pl.num_programs(1)

        @pl.when(v == 0)
        def _():
            m_sc[...] = jnp.full_like(m_sc, -jnp.inf)
            l_sc[...] = jnp.zeros_like(l_sc)
            ws_sc[...] = jnp.zeros_like(ws_sc)

        x = logits_ref[...].astype(jnp.float32)                 # (tile_n, tile_v) f32
        lbl = labels_ref[...]                                   # (tile_n, 1) int32

        # (1, tile_v) global column index; broadcasting handles the (tile_n,1) label
        # compare without materializing a full-tile i32 iota.
        col = lax.broadcasted_iota(jnp.int32, (1, tile_v), 1) + v * tile_v

        if v_ragged:
            col_ok = col < vocab                                 # (1, tile_v) bool
            x_lse = jnp.where(col_ok, x, -jnp.inf)               # neutral for max / exp-sum
        else:
            x_lse = x

        # Online (running-max) logsumexp across the V tiles.
        m_prev = m_sc[...]
        m_new = jnp.maximum(m_prev, jnp.max(x_lse, axis=-1, keepdims=True))
        alpha = jnp.exp(m_prev - m_new)
        l_sc[...] = alpha * l_sc[...] + jnp.sum(jnp.exp(x_lse - m_new),
                                                axis=-1, keepdims=True)
        m_sc[...] = m_new

        # Fused smoothed-target dot:  (1-eps)*x[y] + (eps/V)*sum_c x[c] == sum_c w_c*x[c].
        w = jnp.where(col == lbl, w_hit, w_miss)                 # (tile_n, tile_v) f32
        contrib = w * x
        if v_ragged:
            contrib = jnp.where(col_ok, contrib, 0.0)            # select, not *0 (garbage may be inf/nan)
        ws_sc[...] += jnp.sum(contrib, axis=-1, keepdims=True)

        @pl.when(v == nv - 1)
        def _():
            loss = m_sc[...] + jnp.log(l_sc[...]) - ws_sc[...]   # (tile_n, 1)
            valid = lbl != pad_idx
            if row_ragged:
                row = i * tile_n + lax.broadcasted_iota(jnp.int32, (tile_n, 1), 0)
                valid = valid & (row < n_rows)
            # SELECT on the per-row result so NaN/Inf from garbage tail rows are discarded.
            s = jnp.sum(jnp.where(valid, loss, 0.0), axis=0, keepdims=True)
            c = jnp.sum(valid.astype(jnp.float32), axis=0, keepdims=True)
            sum_ref[...] = s.reshape(sum_ref.shape)
            cnt_ref[...] = c.reshape(cnt_ref.shape)

    return kernel


@functools.partial(jax.jit,
                   static_argnames=("label_smoothing", "pad_idx", "tile_n", "tile_v"))
def label_smooth_loss(logits, labels, *, label_smoothing: float = 0.0,
                      pad_idx: int = 0, tile_n: int | None = None,
                      tile_v: int | None = None):
    """Equivalent of LabelSmoothLoss(label_smoothing, pad_idx)(logits, labels)."""
    V = logits.shape[-1]
    logits2d = logits.reshape(-1, V)                    # native dtype: no HBM cast/copy
    labels2d = labels.reshape(-1, 1).astype(jnp.int32)  # tiny, cheap
    N = logits2d.shape[0]
    itemsize = jnp.dtype(logits2d.dtype).itemsize

    auto_n, auto_v, _ = _auto_tiles(N, V, itemsize)
    tn = int(tile_n) if tile_n is not None else auto_n
    tv = int(tile_v) if tile_v is not None else auto_v
    tn = min(tn, N)
    tv = min(tv, V)
    if tn < N:
        assert tn % 8 == 0, "row tile must be a multiple of 8 (or the full row extent)"
    if tv < V:
        assert tv % _LANE == 0, "vocab tile must be a multiple of 128 (or the full vocab)"

    nb = pl.cdiv(N, tn)          # row blocks  ("parallel")
    nv = pl.cdiv(V, tv)          # vocab blocks ("arbitrary", reduction axis last)

    # Real working set: double-buffered input block + ~4 full-tile f32 temps + headroom.
    ws_est = (2 * itemsize + 16) * tn * tv + tn * 64 + (1 << 20)
    capacity = _vmem_capacity_bytes()
    vmem_limit = min(capacity - (4 << 20), max(32 << 20, ws_est + (8 << 20)))

    kernel = _make_kernel(float(label_smoothing), int(pad_idx), V, N, tn, tv)

    sums, cnts = pl.pallas_call(
        kernel,
        out_shape=(jax.ShapeDtypeStruct((nb, 1, 1), jnp.float32),
                   jax.ShapeDtypeStruct((nb, 1, 1), jnp.float32)),
        grid_spec=pltpu.PrefetchScalarGridSpec(
            num_scalar_prefetch=0,
            grid=(nb, nv),
            in_specs=[
                pl.BlockSpec((tn, tv), lambda i, v: (i, v)),
                pl.BlockSpec((tn, 1), lambda i, v: (i, 0)),
            ],
            out_specs=[
                pl.BlockSpec((1, 1, 1), lambda i, v: (i, 0, 0)),
                pl.BlockSpec((1, 1, 1), lambda i, v: (i, 0, 0)),
            ],
            scratch_shapes=[pltpu.VMEM((tn, 1), jnp.float32)] * 3,
        ),
        compiler_params=pltpu.CompilerParams(
            # TODO(synk): on v7x confirm in xprof that the "parallel" row axis is
            # actually sharded across both TensorCores; if not, switch to
            # pltpu.CORE_PARALLEL for that axis.
            dimension_semantics=("parallel", "arbitrary"),
            vmem_limit_bytes=int(vmem_limit)),
    )(logits2d, labels2d)

    # Mean over non-ignored tokens (nan if every label == pad_idx, same as PyTorch).
    return jnp.sum(sums) / jnp.sum(cnts)


def _reference(logits, labels, label_smoothing, pad_idx):
    """Pure-JAX reference implementing nn.CrossEntropyLoss semantics."""
    V = logits.shape[-1]
    x = logits.reshape(-1, V).astype(jnp.float32)
    y = labels.reshape(-1).astype(jnp.int32)
    lse = jax.nn.logsumexp(x, axis=-1)
    picked = jnp.take_along_axis(x, y[:, None], axis=-1)[:, 0]
    row_sum = jnp.sum(x, axis=-1)
    eps = label_smoothing
    per = lse - (1.0 - eps) * picked - (eps / V) * row_sum
    valid = (y != pad_idx).astype(jnp.float32)
    return jnp.sum(per * valid) / jnp.sum(valid)


if __name__ == "__main__":
    key = jax.random.PRNGKey(0)
    k1, k2, k3, k4, k5, k6 = jax.random.split(key, 6)

    # Case 1: small GPT-style shapes, single block.
    batch, seq, vocab = 2, 8, 32
    label_smoothing, pad_idx = 0.1, 0
    logits = jax.random.normal(k1, (batch, seq, vocab), dtype=jnp.float32)
    labels = jax.random.randint(k2, (batch, seq), 0, vocab, dtype=jnp.int32)
    labels = labels.at[0, 0].set(pad_idx).at[1, 3].set(pad_idx)   # exercise ignore_index

    out = label_smooth_loss(logits, labels,
                            label_smoothing=label_smoothing, pad_idx=pad_idx)
    out = jax.block_until_ready(out)
    ref = _reference(logits, labels, label_smoothing, pad_idx)
    assert jnp.allclose(out, ref, rtol=1e-5, atol=1e-5), (out, ref)

    # Case 2: vocab not a multiple of 128, rows not a multiple of the sublane tile.
    b2, s2, v2 = 3, 7, 160
    logits2 = jax.random.normal(k3, (b2, s2, v2), dtype=jnp.float32)
    labels2 = jax.random.randint(k4, (b2, s2), 0, v2, dtype=jnp.int32)
    labels2 = labels2.at[0, 2].set(pad_idx)
    out2 = label_smooth_loss(logits2, labels2, label_smoothing=0.05, pad_idx=pad_idx)
    out2 = jax.block_until_ready(out2)
    ref2 = _reference(logits2, labels2, 0.05, pad_idx)
    assert jnp.allclose(out2, ref2, rtol=1e-5, atol=1e-5), (out2, ref2)

    # Case 3: forced small tiles exercise ragged rows, ragged vocab tail and the
    # online-logsumexp V-tiling path (tile_n=16 < N=40, tile_v=128 < V=300).
    b3, s3, v3 = 5, 8, 300
    logits3 = jax.random.normal(k5, (b3, s3, v3), dtype=jnp.float32) * 3.0
    labels3 = jax.random.randint(k6, (b3, s3), 0, v3, dtype=jnp.int32)
    labels3 = labels3.at[0, 1].set(pad_idx).at[4, 7].set(pad_idx)
    out3 = label_smooth_loss(logits3, labels3, label_smoothing=0.1, pad_idx=pad_idx,
                             tile_n=16, tile_v=128)
    out3 = jax.block_until_ready(out3)
    ref3 = _reference(logits3, labels3, 0.1, pad_idx)
    assert jnp.allclose(out3, ref3, rtol=1e-5, atol=1e-5), (out3, ref3)

    print("KERNEL_OK")
</pallas_src>

<mosaic_0001>
module attributes {stable_mosaic.version = 11 : i64} {
  func.func @kernel(%arg0: i32, %arg1: i32, %arg2: memref<16x32xf32, #tpu.memory_space<vmem>>, %arg3: memref<16x1xi32, #tpu.memory_space<vmem>>, %arg4: memref<1x1x1xf32, #tpu.memory_space<vmem>>, %arg5: memref<1x1x1xf32, #tpu.memory_space<vmem>>, %arg6: memref<16x1xf32, #tpu.memory_space<vmem>>, %arg7: memref<16x1xf32, #tpu.memory_space<vmem>>, %arg8: memref<16x1xf32, #tpu.memory_space<vmem>>) attributes {dimension_semantics = [#tpu.dimension_semantics<parallel>, #tpu.dimension_semantics<arbitrary>], iteration_bounds = array<i64: 1, 1>, scalar_prefetch = 0 : i64, scratch_operands = 3 : i64, tpu.core_type = #tpu.core_type<tc>, window_params = [{transform_indices = @transform_0, window_bounds = array<i64: 16, 32>}, {transform_indices = @transform_1, window_bounds = array<i64: 16, 1>}, {transform_indices = @transform_2, window_bounds = array<i64: 1, 1, 1>}, {transform_indices = @transform_3, window_bounds = array<i64: 1, 1, 1>}]} {
    %c0_i32 = arith.constant 0 : i32
    %0 = arith.cmpi eq, %arg1, %c0_i32 : i32
    %1 = arith.extui %0 : i1 to i32
    %c0_i32_0 = arith.constant 0 : i32
    %2 = arith.cmpi ne, %1, %c0_i32_0 : i32
    scf.if %2 {
      %cst_22 = arith.constant 0xFF800000 : f32
      %40 = vector.broadcast %cst_22 : f32 to vector<16x1xf32>
      %c0_23 = arith.constant 0 : index
      %c0_24 = arith.constant 0 : index
      %41 = vector.load %arg6[%c0_23, %c0_24] : memref<16x1xf32, #tpu.memory_space<vmem>>, vector<16x1xf32>
      tpu.vector_store %arg6[%c0_23, %c0_24], %40 {strides = array<i32>} : memref<16x1xf32, #tpu.memory_space<vmem>>, vector<16x1xf32>,
      %cst_25 = arith.constant 0.000000e+00 : f32
      %42 = vector.broadcast %cst_25 : f32 to vector<16x1xf32>
      %c0_26 = arith.constant 0 : index
      %c0_27 = arith.constant 0 : index
      %43 = vector.load %arg7[%c0_26, %c0_27] : memref<16x1xf32, #tpu.memory_space<vmem>>, vector<16x1xf32>
      tpu.vector_store %arg7[%c0_26, %c0_27], %42 {strides = array<i32>} : memref<16x1xf32, #tpu.memory_space<vmem>>, vector<16x1xf32>,
      %cst_28 = arith.constant 0.000000e+00 : f32
      %44 = vector.broadcast %cst_28 : f32 to vector<16x1xf32>
      %c0_29 = arith.constant 0 : index
      %c0_30 = arith.constant 0 : index
      %45 = vector.load %arg8[%c0_29, %c0_30] : memref<16x1xf32, #tpu.memory_space<vmem>>, vector<16x1xf32>
      tpu.vector_store %arg8[%c0_29, %c0_30], %44 {strides = array<i32>} : memref<16x1xf32, #tpu.memory_space<vmem>>, vector<16x1xf32>,
    } else {
    }
    %c0 = arith.constant 0 : index
    %c0_1 = arith.constant 0 : index
    %3 = vector.load %arg2[%c0, %c0_1] : memref<16x32xf32, #tpu.memory_space<vmem>>, vector<16x32xf32>
    %c0_2 = arith.constant 0 : index
    %c0_3 = arith.constant 0 : index
    %4 = vector.load %arg3[%c0_2, %c0_3] : memref<16x1xi32, #tpu.memory_space<vmem>>, vector<16x1xi32>
    %5 = tpu.iota {dimensions = array<i32: 1>} : vector<1x32xi32>
    %c32_i32 = arith.constant 32 : i32
    %6 = arith.muli %arg1, %c32_i32 : i32
    %7 = vector.broadcast %6 : i32 to vector<1x32xi32>
    %8 = arith.addi %5, %7 : vector<1x32xi32>
    %c0_4 = arith.constant 0 : index
    %c0_5 = arith.constant 0 : index
    %9 = vector.load %arg6[%c0_4, %c0_5] : memref<16x1xf32, #tpu.memory_space<vmem>>, vector<16x1xf32>
    %cst = arith.constant dense<0xFF800000> : vector<16xf32>
    %10 = vector.multi_reduction <maximumf>, %3, %cst [1] : vector<16x32xf32> to vector<16xf32>
    %11 = vector.shape_cast %10 : vector<16xf32> to vector<16x1xf32>
    %12 = arith.maximumf %9, %11 : vector<16x1xf32>
    %13 = arith.subf %9, %12 : vector<16x1xf32>
    %14 = math.exp %13 : vector<16x1xf32>
    %c0_6 = arith.constant 0 : index
    %c0_7 = arith.constant 0 : index
    %15 = vector.load %arg7[%c0_6, %c0_7] : memref<16x1xf32, #tpu.memory_space<vmem>>, vector<16x1xf32>
    %16 = arith.mulf %14, %15 : vector<16x1xf32>
    %17 = vector.broadcast %12 : vector<16x1xf32> to vector<16x32xf32>
    %18 = arith.subf %3, %17 : vector<16x32xf32>
    %19 = math.exp %18 : vector<16x32xf32>
    %cst_8 = arith.constant dense<0.000000e+00> : vector<16xf32>
    %20 = vector.multi_reduction <add>, %19, %cst_8 [1] : vector<16x32xf32> to vector<16xf32>
    %21 = vector.shape_cast %20 : vector<16xf32> to vector<16x1xf32>
    %22 = arith.addf %16, %21 : vector<16x1xf32>
    %c0_9 = arith.constant 0 : index
    %c0_10 = arith.constant 0 : index
    %23 = vector.load %arg7[%c0_9, %c0_10] : memref<16x1xf32, #tpu.memory_space<vmem>>, vector<16x1xf32>
    tpu.vector_store %arg7[%c0_9, %c0_10], %22 {strides = array<i32>} : memref<16x1xf32, #tpu.memory_space<vmem>>, vector<16x1xf32>,
    %c0_11 = arith.constant 0 : index
    %c0_12 = arith.constant 0 : index
    %24 = vector.load %arg6[%c0_11, %c0_12] : memref<16x1xf32, #tpu.memory_space<vmem>>, vector<16x1xf32>
    tpu.vector_store %arg6[%c0_11, %c0_12], %12 {strides = array<i32>} : memref<16x1xf32, #tpu.memory_space<vmem>>, vector<16x1xf32>,
    %25 = vector.broadcast %8 : vector<1x32xi32> to vector<16x32xi32>
    %26 = vector.broadcast %4 : vector<16x1xi32> to vector<16x32xi32>
    %27 = arith.cmpi eq, %25, %26 : vector<16x32xi32>
    %cst_13 = arith.constant 0.903124988 : f32
    %cst_14 = arith.constant 3.125000e-03 : f32
    %28 = vector.broadcast %cst_13 : f32 to vector<16x32xf32>
    %29 = vector.broadcast %cst_14 : f32 to vector<16x32xf32>
    %30 = arith.select %27, %28, %29 : vector<16x32xi1>, vector<16x32xf32>
    %31 = arith.mulf %30, %3 : vector<16x32xf32>
    %c0_15 = arith.constant 0 : index
    %c0_16 = arith.constant 0 : index
    %32 = vector.load %arg8[%c0_15, %c0_16] : memref<16x1xf32, #tpu.memory_space<vmem>>, vector<16x1xf32>
    %cst_17 = arith.constant dense<0.000000e+00> : vector<16xf32>
    %33 = vector.multi_reduction <add>, %31, %cst_17 [1] : vector<16x32xf32> to vector<16xf32>
    %34 = vector.shape_cast %33 : vector<16xf32> to vector<16x1xf32>
    %35 = arith.addf %32, %34 : vector<16x1xf32>
    %c0_18 = arith.constant 0 : index
    %c0_19 = arith.constant 0 : index
    %36 = vector.load %arg8[%c0_18, %c0_19] : memref<16x1xf32, #tpu.memory_space<vmem>>, vector<16x1xf32>
    tpu.vector_store %arg8[%c0_18, %c0_19], %35 {strides = array<i32>} : memref<16x1xf32, #tpu.memory_space<vmem>>, vector<16x1xf32>,
    %c0_i32_20 = arith.constant 0 : i32
    %37 = arith.cmpi eq, %arg1, %c0_i32_20 : i32
    %38 = arith.extui %37 : i1 to i32
    %c0_i32_21 = arith.constant 0 : i32
    %39 = arith.cmpi ne, %38, %c0_i32_21 : i32
    scf.if %39 {
      %c0_22 = arith.constant 0 : index
      %c0_23 = arith.constant 0 : index
      %40 = vector.load %arg6[%c0_22, %c0_23] : memref<16x1xf32, #tpu.memory_space<vmem>>, vector<16x1xf32>
      %c0_24 = arith.constant 0 : index
      %c0_25 = arith.constant 0 : index
      %41 = vector.load %arg7[%c0_24, %c0_25] : memref<16x1xf32, #tpu.memory_space<vmem>>, vector<16x1xf32>
      %42 = math.log %41 : vector<16x1xf32>
      %43 = arith.addf %40, %42 : vector<16x1xf32>
      %c0_26 = arith.constant 0 : index
      %c0_27 = arith.constant 0 : index
      %44 = vector.load %arg8[%c0_26, %c0_27] : memref<16x1xf32, #tpu.memory_space<vmem>>, vector<16x1xf32>
      %45 = arith.subf %43, %44 : vector<16x1xf32>
      %c0_i32_28 = arith.constant 0 : i32
      %46 = vector.broadcast %c0_i32_28 : i32 to vector<16x1xi32>
      %47 = arith.cmpi ne, %4, %46 : vector<16x1xi32>
      %cst_29 = arith.constant 0.000000e+00 : f32
      %48 = vector.broadcast %cst_29 : f32 to vector<16x1xf32>
      %49 = arith.select %47, %45, %48 : vector<16x1xi1>, vector<16x1xf32>
      %cst_30 = arith.constant dense<0.000000e+00> : vector<1xf32>
      %50 = vector.multi_reduction <add>, %49, %cst_30 [0] : vector<16x1xf32> to vector<1xf32>
      %51 = vector.shape_cast %50 : vector<1xf32> to vector<1x1xf32>
      %52 = arith.extui %47 : vector<16x1xi1> to vector<16x1xi32>
      %53 = arith.sitofp %52 : vector<16x1xi32> to vector<16x1xf32>
      %cst_31 = arith.constant dense<0.000000e+00> : vector<1xf32>
      %54 = vector.multi_reduction <add>, %53, %cst_31 [0] : vector<16x1xf32> to vector<1xf32>
      %55 = vector.shape_cast %54 : vector<1xf32> to vector<1x1xf32>
      %56 = vector.shape_cast %51 : vector<1x1xf32> to vector<1x1x1xf32>
      %c0_32 = arith.constant 0 : index
      %c0_33 = arith.constant 0 : index
      %c0_34 = arith.constant 0 : index
      %57 = vector.load %arg4[%c0_32, %c0_33, %c0_34] : memref<1x1x1xf32, #tpu.memory_space<vmem>>, vector<1x1x1xf32>
      tpu.vector_store %arg4[%c0_32, %c0_33, %c0_34], %56 {strides = array<i32>} : memref<1x1x1xf32, #tpu.memory_space<vmem>>, vector<1x1x1xf32>,
      %58 = vector.shape_cast %55 : vector<1x1xf32> to vector<1x1x1xf32>
      %c0_35 = arith.constant 0 : index
      %c0_36 = arith.constant 0 : index
      %c0_37 = arith.constant 0 : index
      %59 = vector.load %arg5[%c0_35, %c0_36, %c0_37] : memref<1x1x1xf32, #tpu.memory_space<vmem>>, vector<1x1x1xf32>
      tpu.vector_store %arg5[%c0_35, %c0_36, %c0_37], %58 {strides = array<i32>} : memref<1x1x1xf32, #tpu.memory_space<vmem>>, vector<1x1x1xf32>,
    } else {
    }
    return
  }
  func.func @transform_0(%arg0: i32, %arg1: i32) -> (i32, i32) {
    %c0_i32 = arith.constant 0 : i32
    return %arg0, %arg1 : i32, i32
  }
  func.func @transform_1(%arg0: i32, %arg1: i32) -> (i32, i32) {
    %c0_i32 = arith.constant 0 : i32
    %c0_i32_0 = arith.constant 0 : i32
    return %arg0, %c0_i32 : i32, i32
  }
  func.func @transform_2(%arg0: i32, %arg1: i32) -> (i32, i32, i32) {
    %c0_i32 = arith.constant 0 : i32
    %c0_i32_0 = arith.constant 0 : i32
    %c0_i32_1 = arith.constant 0 : i32
    return %arg0, %c0_i32, %c0_i32_0 : i32, i32, i32
  }
  func.func @transform_3(%arg0: i32, %arg1: i32) -> (i32, i32, i32) {
    %c0_i32 = arith.constant 0 : i32
    %c0_i32_0 = arith.constant 0 : i32
    %c0_i32_1 = arith.constant 0 : i32
    return %arg0, %c0_i32, %c0_i32_0 : i32, i32, i32
  }
}

</mosaic_0001>

<bundles_post_ra>
// kernel: label_smooth_loss.1
= control target key start
LH: loop header
LB: loop body
LE: loop exit
PB: predicated region body
PF: predicated region fallthrough
CT: control target
= control target key end

     0   :  { %9 = vsyncpa [#allocation6], 0  ;;  %vm37_vm0 = vcmask 261120   ;;  %s357_s0 = inlined_call_operand.vmem [shape: f32[16,32], index: 0, kind: input, shape index: {}]   ;;  %s358_s1 = inlined_call_operand.vmem [shape: s32[16,1], index: 1, kind: input, shape index: {}]   ;;  %s359_s2 = inlined_call_operand.hbm [shape: f32[1,1,1], index: 2, kind: output, shape index: {0}]   ;;  %s360_s3 = inlined_call_operand.hbm [shape: f32[1,1,1], index: 3, kind: output, shape index: {1}]  }
   0x1   :  { %v26_v0 = vld [vmem:[%s357_s0] sm:$0xff]  ;;  %v27_v1 = vld [vmem:[%s357_s0 + $0x8] sm:$0xff] }
   0x2   :  { %10 = vsyncpa [#allocation8], 0  ;;  %v38_v2 = vsel %vm37_vm0, %v26_v0, -inf  ;;  %v41_v3 = vsel %vm37_vm0, %v27_v1, -inf  ;;  %vm19_vm1 = vcmask 7168   ;;  %v249_v4 = vmov -inf  }
   0x3   :  { %39 = vmax.xlane.f32.xlu0 %v38_v2  ;;  %20 = vst.msk [vmem:[#allocation2] sm:$0xff] %vm19_vm1, %v249_v4  ;;  %21 = vst.msk [vmem:[#allocation2 + $0x8] sm:$0xff] %vm19_vm1, %v249_v4  ;;  %v250_v5 = vmov 0   ;;  %v251_v6 = vmov 0.0   ;;  %v292_v7 = vld [vmem:[%s358_s1] sm:$0xff]  ;;  %v318_v16 = vld [vmem:[%s358_s1 + $0x8] sm:$0xff]  ;;  %v30_v17 = vlaneseq }
   0x4   :  { %191 = vset.pattern.permute.xlu1 %v250_v5  ;;  %192 = vset.pattern.permute.xlu0 %v250_v5  ;;  %22 = vst.msk [vmem:[#allocation3] sm:$0xff] %vm19_vm1, %v251_v6  ;;  %23 = vst.msk [vmem:[#allocation3 + $0x8] sm:$0xff] %vm19_vm1, %v251_v6  ;;  %v252_v20 = vmov 0.003125   ;;  %vm127_vm4 = vcmp.ne.s32.totalorder %v318_v16, 0  ;;  %vm126_vm5 = vcmp.ne.s32.totalorder %v292_v7, 0 }
   0x5   :  { %24 = vst.msk [vmem:[#allocation4] sm:$0xff] %vm19_vm1, %v251_v6  ;;  %25 = vst.msk [vmem:[#allocation4 + $0x8] sm:$0xff] %vm19_vm1, %v251_v6  ;;  %v31_v18 = vand.u32 127, %v30_v17  ;;  %v184_v41 = vsel %vm127_vm4, 1.0, %v251_v6  ;;  %v183_v42 = vsel %vm126_vm5, 1.0, %v251_v6  ;;  %vm152_vm6 = vcmask 0  }
   0x6   :  { %v144_v43 = vsel %vm19_vm1, %v184_v41, 0.0  ;;  %v143_v44 = vsel %vm19_vm1, %v183_v42, 0.0  ;;  %s253_s1 = smov [#allocation7]  }
   0x7   :  { %42 = vmax.xlane.f32.xlu0 %v41_v3  ;;  %v145_v45 = vadd.f32 %v144_v43, %v143_v44  ;;  %s171_s19 = sshll.u32 %s253_s1, 4  ;;  %s172_s19 = int_to_ptr.vmem [resolvable:$true] %s171_s19 }
   0x8   :  { %s205_s20 = scalar_lea.vmem %s172_s19, 16  ;;  %s209_s21 = scalar_lea.vmem %s172_s19, 32 }
   0x9   :  { %v146_v46 = vrot.slane %v145_v45, 4  ;;  %p206_p0 = scmp.ne.s32.totalorder %s172_s19, %s205_s20  ;;  %p210_p1 = scmp.lt.s32.totalorder %s172_s19, %s172_s19 }
   0xa   :  { %v295_v8 = vld [vmem:[#allocation2] sm:$0xff]  ;;  %v300_v11 = vld [vmem:[#allocation2 + $0x8] sm:$0xff]  ;;  %p211_p2 = scmp.lt.s32.totalorder %s209_s21, %s205_s20 }
   0xb   :  { %v147_v47 = vadd.f32 %v146_v46, %v145_v45 }
   0xc   :  { %v97_v38 = vld [vmem:[#allocation4] sm:$0xff]  ;;  %p212_p3 = por %p211_p2, %p210_p1 }
   0xd   :  { %v148_v48 = vrot.slane %v147_v47, 2 }
   0xe   :  { %p213_p4 = pnand %p212_p3, %p206_p0 }
   0xf   :  { %v149_v49 = vadd.f32 %v148_v48, %v147_v47 }
  0x11   :  { %v150_v50 = vrot.slane %v149_v49, 1 }
  0x13   :  { %v151_v51 = vadd.f32 %v150_v50, %v149_v49 }
  0x15   :  { %154 = vst.msk [vmem:[#allocation7] sm:$0x1] %vm152_vm6, %v151_v51 }
  0x1d   :  { %86 = vperm.xlu0 %192, %v292_v7  }
  0x8c   :  { %v40_v9 = vpop.xlane.xlu0 %39 }
  0x8d   :  { %v298_v10 = vmax.f32 %v295_v8, %v40_v9 }
  0x8f   :  { %v46_v12 = vsub.f32 %v295_v8, %v298_v10  ;;  %83 = vst.msk [vmem:[#allocation2] sm:$0xff] %vm19_vm1, %v298_v10  ;;  %58 = vperm.xlu1 %191, %v298_v10  }
  0x90   :  { %v43_v13 = vpop.xlane.xlu0 %42 }
  0x91   :  { %v308_v14 = vmax.f32 %v300_v11, %v43_v13 }
  0x93   :  { %v47_v15 = vsub.f32 %v300_v11, %v308_v14  ;;  %84 = vst.msk [vmem:[#allocation2 + $0x8] sm:$0xff] %vm19_vm1, %v308_v14  ;;  %63 = vperm.xlu1 %191, %v308_v14  }
  0x97   :  { %89 = vperm.xlu1 %191, %v318_v16  }
  0x98   :  { %v87_v19 = vpop.permute.xlu0 %86 }
  0x99   :  { %vm91_vm2 = vcmp.eq.s32.totalorder %v31_v18, %v87_v19 }
  0x9a   :  { %v93_v21 = vsel %vm91_vm2, 0.903125, %v252_v20 }
  0x9b   :  { %v95_v22 = vmul.f32 %v93_v21, %v26_v0 }
  0x9d   :  { %v99_v23 = vsel %vm37_vm0, %v95_v22, 0.0 }
  0x9e   :  { %100 = vadd.xlane.f32.xlu0 %v99_v23 }
 0x10a   :  { %v59_v24 = vpop.permute.xlu1 %58 }
 0x10b   :  { %v66_v25 = vsub.f32 %v26_v0, %v59_v24 }
 0x10d   :  { %v68_v26 = vmul.f32 1.442695, %v66_v25 }
 0x10e   :  { %v64_v27 = vpop.permute.xlu1 %63 }
 0x10f   :  { %193 = vpow2.f32 %v68_v26  ;;  %v67_v28 = vsub.f32 %v27_v1, %v64_v27 }
 0x111   :  { %v70_v29 = vmul.f32 1.442695, %v67_v28 }
 0x112   :  { %v90_v30 = vpop.permute.xlu1 %89 }
 0x113   :  { %195 = vpow2.f32 %v70_v29  ;;  %vm92_vm3 = vcmp.eq.s32.totalorder %v31_v18, %v90_v30 }
 0x114   :  { %v94_v33 = vsel %vm92_vm3, 0.903125, %v252_v20 }
 0x115   :  { %v96_v36 = vmul.f32 %v94_v33, %v27_v1 }
 0x117   :  { %v102_v37 = vsel %vm37_vm0, %v96_v36, 0.0 }
 0x11c   :  { %v194_v31 = vpop.eup %193 }
 0x11d   :  { %v72_v32 = vsel %vm37_vm0, %v194_v31, 0.0 }
 0x11e   :  { %73 = vadd.xlane.f32.xlu1 %v72_v32 }
 0x120   :  { %v196_v34 = vpop.eup %195 }
 0x121   :  { %v75_v35 = vsel %vm37_vm0, %v196_v34, 0.0 }
 0x122   :  { %76 = vadd.xlane.f32.xlu1 %v75_v35 }
 0x126   :  { %103 = vadd.xlane.f32.xlu1 %v102_v37 }
 0x127   :  { %v101_v39 = vpop.xlane.xlu0 %100 }
 0x128   :  { %v105_v40 = vadd.f32 %v101_v39, %v97_v38 }
 0x12a   :  { %107 = vst.msk [vmem:[#allocation4] sm:$0xff] %vm19_vm1, %v105_v40 }
 0x12b   :  { %216 = shalt.err (!%p213_p4)
}
 0x12c   :  { %174 = dma.vmem_to_hbm [thread:$0]  %s172_s19, 16, %s360_s3, [#allocation8]   ;;  %v48_v52 = vmul.f32 1.442695, %v46_v12  ;;  %v50_v53 = vmul.f32 1.442695, %v47_v15 }
 0x12d   :  { %v52_v55 = vld [vmem:[#allocation3] sm:$0xff]  ;;  %v53_v59 = vld [vmem:[#allocation3 + $0x8] sm:$0xff]  ;;  %v98_v0 = vld [vmem:[#allocation4 + $0x8] sm:$0xff]  ;;  %s254_s3 = smov [#allocation5]  }
 0x12e   :  { %197 = vpow2.f32 %v48_v52  ;;  %v112_v8 = vld [vmem:[#allocation2] sm:$0xff]  ;;  %v113_v14 = vld [vmem:[#allocation2 + $0x8] sm:$0xff]  ;;  %s161_s24 = sshll.u32 %s254_s3, 4  ;;  %s162_s24 = int_to_ptr.vmem [resolvable:$true] %s161_s24 }
 0x12f   :  { %199 = vpow2.f32 %v50_v53  ;;  %s225_s25 = scalar_lea.vmem %s162_s24, 16  ;;  %s229_s26 = scalar_lea.vmem %s162_s24, 32 }
 0x130   :  { %p226_p5 = scmp.ne.s32.totalorder %s162_s24, %s225_s25  ;;  %p230_p6 = scmp.lt.s32.totalorder %s162_s24, %s162_s24 }
 0x131   :  { %v122_v9 = vld [vmem:[#allocation4] sm:$0xff]  ;;  %p231_p7 = scmp.lt.s32.totalorder %s229_s26, %s225_s25 }
 0x133   :  { %p232_p8 = por %p231_p7, %p230_p6 }
 0x135   :  { %p233_p9 = pnand %p232_p8, %p226_p5 }
 0x13b   :  { %v198_v54 = vpop.eup %197 }
 0x13c   :  { %v54_v56 = vmul.f32 %v198_v54, %v52_v55  ;;  %v200_v57 = vpop.eup %199 }
 0x13d   :  { %v55_v61 = vmul.f32 %v200_v57, %v53_v59 }
 0x1a7   :  { %v74_v58 = vpop.xlane.xlu1 %73 }
 0x1a8   :  { %v78_v60 = vadd.f32 %v74_v58, %v54_v56 }
 0x1aa   :  { %81 = vst.msk [vmem:[#allocation3] sm:$0xff] %vm19_vm1, %v78_v60 }
 0x1ab   :  { %v77_v62 = vpop.xlane.xlu1 %76 }
 0x1ac   :  { %v79_v63 = vadd.f32 %v77_v62, %v55_v61 }
 0x1ae   :  { %82 = vst.msk [vmem:[#allocation3 + $0x8] sm:$0xff] %vm19_vm1, %v79_v63 }
 0x1af   :  { %v104_v1 = vpop.xlane.xlu1 %103 }
 0x1b0   :  { %v106_v2 = vadd.f32 %v104_v1, %v98_v0 }
 0x1b1   :  { %v114_v3 = vld [vmem:[#allocation3] sm:$0xff] }
 0x1b2   :  { %108 = vst.msk [vmem:[#allocation4 + $0x8] sm:$0xff] %vm19_vm1, %v106_v2  ;;  %201 = vlog2.f32 %v114_v3 }
 0x1b5   :  { %v115_v4 = vld [vmem:[#allocation3 + $0x8] sm:$0xff] }
 0x1b6   :  { %203 = vlog2.f32 %v115_v4 }
 0x1b9   :  { %v123_v17 = vld [vmem:[#allocation4 + $0x8] sm:$0xff] }
 0x1bf   :  { %v202_v5 = vpop.eup %201 }
 0x1c0   :  { %v117_v6 = vmul.f32 0.6931472, %v202_v5 }
 0x1c2   :  { %v120_v10 = vadd.f32 %v117_v6, %v112_v8 }
 0x1c3   :  { %v204_v11 = vpop.eup %203 }
 0x1c4   :  { %v119_v12 = vmul.f32 0.6931472, %v204_v11  ;;  %v124_v13 = vsub.f32 %v120_v10, %v122_v9 }
 0x1c6   :  { %v121_v15 = vadd.f32 %v119_v12, %v113_v14  ;;  %v128_v19 = vsel %vm126_vm5, %v124_v13, 0.0 }
 0x1c7   :  { %v130_v21 = vsel %vm19_vm1, %v128_v19, 0.0 }
 0x1c8   :  { %v125_v18 = vsub.f32 %v121_v15, %v123_v17 }
 0x1ca   :  { %v129_v20 = vsel %vm127_vm4, %v125_v18, 0.0 }
 0x1cb   :  { %v131_v22 = vsel %vm19_vm1, %v129_v20, 0.0 }
 0x1cc   :  { %v132_v23 = vadd.f32 %v131_v22, %v130_v21 }
 0x1ce   :  { %v133_v24 = vrot.slane %v132_v23, 4 }
 0x1d0   :  { %v134_v25 = vadd.f32 %v133_v24, %v132_v23 }
 0x1d2   :  { %v135_v26 = vrot.slane %v134_v25, 2 }
 0x1d4   :  { %v136_v27 = vadd.f32 %v135_v26, %v134_v25 }
 0x1d6   :  { %v137_v28 = vrot.slane %v136_v27, 1 }
 0x1d8   :  { %v138_v29 = vadd.f32 %v137_v28, %v136_v27 }
 0x1da   :  { %153 = vst.msk [vmem:[#allocation5] sm:$0x1] %vm152_vm6, %v138_v29 }
 0x1db   :  { %236 = shalt.err (!%p233_p9)
}
 0x1dc   :  { %164 = dma.vmem_to_hbm [thread:$0]  %s162_s24, 16, %s359_s2, [#allocation6]  }
 0x1dd   :  { %245 = dma.done.wait [#allocation6], 16  }
 0x1de   :  { %246 = vsyncadd [#allocation6], 4294967280 }
 0x1df   :  { %247 = dma.done.wait [#allocation8], 16  }
 0x1e0   :  { %248 = vsyncadd [#allocation8], 4294967280 }
 0x1e1   :  { %181 = vsyncpa [#allocation6], 1 }
 0x1e2   :  { %182 = vsyncpa [#allocation8], 1 }

</bundles_post_ra>
